<compile_context>
chip_gen: v7x
topology: tpu7x:2x2x1
jax: 0.10.0
libtpu: 0.0.40
codegen_flags: <defaults>
</compile_context>

<pallas_src>
from functools import partial

import jax
import jax.numpy as jnp
from jax import lax
from jax.experimental import pallas as pl
from jax.experimental.pallas import tpu as pltpu


def _mlp_kernel(x_ref, w1_ref, b1_ref, w2_ref, b2_ref, o_ref):
    # x tile: [tb, I] f32 from HBM; cast to the MXU operand dtype in-kernel
    # (free VPU work hidden under the input DMA; no-op if weights are f32).
    x = x_ref[...].astype(w1_ref.dtype)

    # h^T = W1 [H, I] contracted with x [tb, I] over I  ->  [H, tb]
    # (batch on the lane axis -> all following VPU/EUP ops are lane-dense).
    ht = lax.dot_general(
        w1_ref[...], x,
        dimension_numbers=(((1,), (1,)), ((), ())),
        preferred_element_type=jnp.float32,
    )
    # Bias + relu in f32 on the VPU (v5e has no bf16 VPU path). b1 is [H, 1].
    ht = jnp.maximum(ht + b1_ref[...], 0.0)

    # y^T = W2 [O, H] @ h^T [H, tb] -> [O, tb]; cast only the MXU operand.
    yt = jnp.dot(w2_ref[...], ht.astype(w2_ref.dtype),
                 preferred_element_type=jnp.float32)
    yt = yt + b2_ref[...]                      # b2 is [O, 1]

    # sigmoid on the EUP; fully lane-dense f32 store of the [O, tb] slab.
    o_ref[...] = jax.nn.sigmoid(yt).astype(o_ref.dtype)


def prepare_task_allocation_params(w1, b1, w2, b2, *, compute_dtype=jnp.bfloat16):
    """One-time parameter prep (torch nn.Linear layout in, kernel layout out).

    w1: [H, I], b1: [H], w2: [O, H], b2: [O].
    The transposed (batch-on-lanes) kernel contracts directly on I / H, so the
    torch weight layouts are used as-is (no transposes); biases become column
    vectors that broadcast along the lane (batch) axis.
    """
    return {
        "w1": jnp.asarray(w1).astype(compute_dtype),                 # [H, I]
        "b1": jnp.asarray(b1).astype(jnp.float32).reshape(-1, 1),    # [H, 1]
        "w2": jnp.asarray(w2).astype(compute_dtype),                 # [O, H]
        "b2": jnp.asarray(b2).astype(jnp.float32).reshape(-1, 1),    # [O, 1]
    }


@partial(jax.jit, static_argnames=("tile_b",))
def task_allocation_forward(x, params, *, tile_b=4096):
    """x: [B, I] float; params from prepare_task_allocation_params. Returns [B, O]."""
    w1, b1 = params["w1"], params["b1"]
    w2, b2 = params["w2"], params["b2"]
    H, I = w1.shape
    O = w2.shape[0]
    B = x.shape[0]

    # Stream activations in f32 directly (no separate HBM cast pass); the
    # bf16 cast for the MXU is done inside the kernel.
    x = x.astype(jnp.float32)

    # Batch tile: lane-aligned (multiple of 128) since batch sits on the lane
    # axis of the output; capped at cdiv(B, 2) so v7x's two TensorCores both
    # get grid steps.  Tiny batches just use the full batch (legal: block dim
    # equal to the full array dim).
    LANE = 128
    if B <= LANE:
        tb = B
    else:
        tb = min(tile_b, pl.cdiv(B, 2))
        tb = pl.cdiv(tb, LANE) * LANE
    grid_b = pl.cdiv(B, tb)  # ragged tail handled by Pallas boundary masking

    out_t = pl.pallas_call(
        _mlp_kernel,
        out_shape=jax.ShapeDtypeStruct((O, B), jnp.float32),
        grid=(grid_b,),
        in_specs=[
            # Activations: one [tb, I] slab per grid step (streamed/pipelined).
            pl.BlockSpec((tb, I), lambda i: (i, 0)),
            # Weights & biases: same block every step -> DMA'd once, VMEM-resident.
            pl.BlockSpec((H, I), lambda i: (0, 0)),
            pl.BlockSpec((H, 1), lambda i: (0, 0)),
            pl.BlockSpec((O, H), lambda i: (0, 0)),
            pl.BlockSpec((O, 1), lambda i: (0, 0)),
        ],
        # Lane-dense output: [O, tb] slab, batch along the 128-lane axis.
        out_specs=pl.BlockSpec((O, tb), lambda i: (0, i)),
        compiler_params=pltpu.CompilerParams(
            # Batch-parallel axis: lets v7x shard grid steps across its 2 TCs.
            dimension_semantics=("parallel",),
        ),
    )(x, w1, b1, w2, b2)

    # Kernel emits [O, B]; transpose the tiny result back so the public API
    # matches the torch module ([B, O]).
    return out_t.T


def _reference(x, w1, b1, w2, b2):
    h = jnp.maximum(x @ w1.T + b1, 0.0)
    return jax.nn.sigmoid(h @ w2.T + b2)


if __name__ == "__main__":
    # Module-consistent feature sizes (input_size=16, hidden=32, output=8);
    # batch large enough to exercise >= 2 grid steps (512-row lane-aligned tiles).
    B, I, H, O = 1024, 16, 32, 8

    key = jax.random.PRNGKey(0)
    kx, k1, kb1, k2, kb2 = jax.random.split(key, 5)

    x = jax.random.normal(kx, (B, I), dtype=jnp.float32)
    # Deterministic synthetic parameters (roughly Kaiming-uniform-ish scale),
    # in torch nn.Linear layout: w1 [H, I], w2 [O, H].
    w1 = jax.random.uniform(k1, (H, I), minval=-1.0, maxval=1.0) / jnp.sqrt(I)
    b1 = jax.random.uniform(kb1, (H,), minval=-1.0, maxval=1.0) / jnp.sqrt(I)
    w2 = jax.random.uniform(k2, (O, H), minval=-1.0, maxval=1.0) / jnp.sqrt(H)
    b2 = jax.random.uniform(kb2, (O,), minval=-1.0, maxval=1.0) / jnp.sqrt(H)

    # One-time layout/dtype prep (hoisted out of the hot path).
    params = prepare_task_allocation_params(w1, b1, w2, b2,
                                            compute_dtype=jnp.bfloat16)

    out = task_allocation_forward(x, params)
    out = jax.block_until_ready(out)

    ref = _reference(x, w1, b1, w2, b2)
    assert out.shape == (B, O)
    # bf16 matmul operands -> relaxed tolerance vs the f32 reference.
    assert jnp.allclose(out, ref, atol=2e-2, rtol=2e-2), "mismatch vs reference"

    print("KERNEL_OK")
</pallas_src>

<mosaic_0001>
module attributes {stable_mosaic.version = 11 : i64} {
  func.func @_mlp_kernel(%arg0: i32, %arg1: memref<512x16xf32, #tpu.memory_space<vmem>>, %arg2: memref<32x16xbf16, #tpu.memory_space<vmem>>, %arg3: memref<32x1xf32, #tpu.memory_space<vmem>>, %arg4: memref<8x32xbf16, #tpu.memory_space<vmem>>, %arg5: memref<8x1xf32, #tpu.memory_space<vmem>>, %arg6: memref<8x512xf32, #tpu.memory_space<vmem>>) attributes {dimension_semantics = [#tpu.dimension_semantics<parallel>], iteration_bounds = array<i64: 2>, scalar_prefetch = 0 : i64, scratch_operands = 0 : i64, tpu.core_type = #tpu.core_type<tc>, window_params = [{transform_indices = @transform_0, window_bounds = array<i64: 512, 16>}, {pipeline_mode = #tpu.pipeline_mode<synchronous>, transform_indices = @transform_1, window_bounds = array<i64: 32, 16>}, {pipeline_mode = #tpu.pipeline_mode<synchronous>, transform_indices = @transform_2, window_bounds = array<i64: 32, 1>}, {pipeline_mode = #tpu.pipeline_mode<synchronous>, transform_indices = @transform_3, window_bounds = array<i64: 8, 32>}, {pipeline_mode = #tpu.pipeline_mode<synchronous>, transform_indices = @transform_4, window_bounds = array<i64: 8, 1>}, {transform_indices = @transform_5, window_bounds = array<i64: 8, 512>}]} {
    %c0 = arith.constant 0 : index
    %c0_0 = arith.constant 0 : index
    %0 = vector.load %arg1[%c0, %c0_0] : memref<512x16xf32, #tpu.memory_space<vmem>>, vector<512x16xf32>
    %1 = arith.truncf %0 : vector<512x16xf32> to vector<512x16xbf16>
    %c0_1 = arith.constant 0 : index
    %c0_2 = arith.constant 0 : index
    %2 = vector.load %arg2[%c0_1, %c0_2] : memref<32x16xbf16, #tpu.memory_space<vmem>>, vector<32x16xbf16>
    %cst = arith.constant dense<0.000000e+00> : vector<32x512xf32>
    %3 = tpu.matmul %2, %1, %cst {dimension_numbers = #tpu.dot_dimension_numbers<[1], [1], [0], [0], [0, 0, 1, 0], [], []>} : vector<32x16xbf16>, vector<512x16xbf16>, vector<32x512xf32> -> vector<32x512xf32>
    %c0_3 = arith.constant 0 : index
    %c0_4 = arith.constant 0 : index
    %4 = vector.load %arg3[%c0_3, %c0_4] : memref<32x1xf32, #tpu.memory_space<vmem>>, vector<32x1xf32>
    %5 = vector.broadcast %4 : vector<32x1xf32> to vector<32x512xf32>
    %6 = arith.addf %3, %5 : vector<32x512xf32>
    %cst_5 = arith.constant 0.000000e+00 : f32
    %7 = vector.broadcast %cst_5 : f32 to vector<32x512xf32>
    %8 = arith.maximumf %6, %7 : vector<32x512xf32>
    %c0_6 = arith.constant 0 : index
    %c0_7 = arith.constant 0 : index
    %9 = vector.load %arg4[%c0_6, %c0_7] : memref<8x32xbf16, #tpu.memory_space<vmem>>, vector<8x32xbf16>
    %10 = arith.truncf %8 : vector<32x512xf32> to vector<32x512xbf16>
    %cst_8 = arith.constant dense<0.000000e+00> : vector<8x512xf32>
    %11 = tpu.matmul %9, %10, %cst_8 {dimension_numbers = #tpu.dot_dimension_numbers<[1], [0], [0], [1], [0, 0, 1, 1], [], []>} : vector<8x32xbf16>, vector<32x512xbf16>, vector<8x512xf32> -> vector<8x512xf32>
    %c0_9 = arith.constant 0 : index
    %c0_10 = arith.constant 0 : index
    %12 = vector.load %arg5[%c0_9, %c0_10] : memref<8x1xf32, #tpu.memory_space<vmem>>, vector<8x1xf32>
    %13 = vector.broadcast %12 : vector<8x1xf32> to vector<8x512xf32>
    %14 = arith.addf %11, %13 : vector<8x512xf32>
    %15 = arith.negf %14 : vector<8x512xf32>
    %16 = math.exp %15 : vector<8x512xf32>
    %cst_11 = arith.constant 1.000000e+00 : f32
    %17 = vector.broadcast %cst_11 : f32 to vector<8x512xf32>
    %18 = arith.addf %17, %16 : vector<8x512xf32>
    %19 = arith.divf %17, %18 : vector<8x512xf32>
    %c0_12 = arith.constant 0 : index
    %c0_13 = arith.constant 0 : index
    %20 = vector.load %arg6[%c0_12, %c0_13] : memref<8x512xf32, #tpu.memory_space<vmem>>, vector<8x512xf32>
    tpu.vector_store %arg6[%c0_12, %c0_13], %19 {strides = array<i32>} : memref<8x512xf32, #tpu.memory_space<vmem>>, vector<8x512xf32>,
    return
  }
  func.func @transform_0(%arg0: i32) -> (i32, i32) {
    %c0_i32 = arith.constant 0 : i32
    %c0_i32_0 = arith.constant 0 : i32
    return %arg0, %c0_i32 : i32, i32
  }
  func.func @transform_1(%arg0: i32) -> (i32, i32) {
    %c0_i32 = arith.constant 0 : i32
    %c0_i32_0 = arith.constant 0 : i32
    %c0_i32_1 = arith.constant 0 : i32
    return %c0_i32, %c0_i32_0 : i32, i32
  }
  func.func @transform_2(%arg0: i32) -> (i32, i32) {
    %c0_i32 = arith.constant 0 : i32
    %c0_i32_0 = arith.constant 0 : i32
    %c0_i32_1 = arith.constant 0 : i32
    return %c0_i32, %c0_i32_0 : i32, i32
  }
  func.func @transform_3(%arg0: i32) -> (i32, i32) {
    %c0_i32 = arith.constant 0 : i32
    %c0_i32_0 = arith.constant 0 : i32
    %c0_i32_1 = arith.constant 0 : i32
    return %c0_i32, %c0_i32_0 : i32, i32
  }
  func.func @transform_4(%arg0: i32) -> (i32, i32) {
    %c0_i32 = arith.constant 0 : i32
    %c0_i32_0 = arith.constant 0 : i32
    %c0_i32_1 = arith.constant 0 : i32
    return %c0_i32, %c0_i32_0 : i32, i32
  }
  func.func @transform_5(%arg0: i32) -> (i32, i32) {
    %c0_i32 = arith.constant 0 : i32
    %c0_i32_0 = arith.constant 0 : i32
    return %c0_i32, %arg0 : i32, i32
  }
}

</mosaic_0001>

<bundles_post_ra>
// kernel: task_allocation_forward.1
= control target key start
LH: loop header
LB: loop body
LE: loop exit
PB: predicated region body
PF: predicated region fallthrough
CT: control target
= control target key end

     0   :  { %10 = vsyncpa [#allocation3], 0  ;;  %s1265_s0 = inlined_call_operand.vmem [shape: f32[1024,16], index: 0, kind: input, shape index: {}]   ;;  %s1266_s1 = inlined_call_operand.vmem [shape: bf16[32,16], index: 1, kind: input, shape index: {}]   ;;  %s1267_s2 = inlined_call_operand.vmem [shape: f32[32,1], index: 2, kind: input, shape index: {}]   ;;  %s1268_s3 = inlined_call_operand.vmem [shape: bf16[8,32], index: 3, kind: input, shape index: {}]   ;;  %s1269_s4 = inlined_call_operand.vmem [shape: f32[8,1], index: 4, kind: input, shape index: {}]   ;;  %s1270_s5 = inlined_call_operand.hbm [shape: f32[8,1024], index: 5, kind: output, shape index: {}]  }
   0x1   :  { %12 = vsyncpa [#allocation3 + $0x1], 0  ;;  %s1026_s18 = smov 0   ;;  %s1028_s19 = smov 0  }
   0x2   :  { %s1030_s20 = smov 0   ;;  %s1032_s21 = smov 0  }
   0x3 LB: > { %s1047_s22 = sadd.s32 4294967295, %s992_s21   ;;  %s789_s23 = sadd.s32 4294967294, %s992_s21   ;;  %s992_s21 = sphi %s1032_s21, %s1276_s21   ;;  %s988_s20 = sphi %s1030_s20, %s1275_s20   ;;  %s984_s19 = sphi %s1028_s19, %s1274_s19   ;;  %s980_s18 = sphi %s1026_s18, %s1273_s18  }
   0x4   : > { %s1051_s24 = sadd.s32 1, %s992_s21   ;;  %s135_s25 = sadd.s32 1, %s988_s20 }
   0x5   : > { %s132_s26 = ssub.s32 %s992_s21, %s1051_s24  ;;  %p145_p0 = scmp.ne.s32.totalorder %s988_s20, %s984_s19 }
   0x6   : > { %p133_p1 = scmp.eq.s32.totalorder %s132_s26, 0  ;;  %p146_p2 = scmp.eq.s32.totalorder %s1047_s22, 1 }
   0x7   : > { %p151_p3 = scmp.ne.s32.totalorder %s984_s19, %s980_s18  ;;  %p152_p4 = scmp.eq.s32.totalorder %s789_s23, 1 }
   0x8   : > { %s1062_s27 = scalar_select %p133_p1, %s988_s20, %s135_s25  }
   0x9   : > { %p1064_p5 = por %p146_p2, %p145_p0  ;;  %p1068_p6 = por %p152_p4, %p151_p3 }
   0xa   : > { %p792_p7 = scmp.ge.s32.totalorder %s992_s21, 1  ;;  %p191_p8 = scmp.lt.s32.totalorder %s992_s21, 3 }
   0xc   : > { %p192_p9 = pnand %p792_p7, %p191_p8 }
   0xd   : > { %s794_s30 = sshll.u32 (!%p192_p9), %s1047_s22, 6  ;;  %v1078_v0 = vld [vmem:[%s1266_s1] sm:$0xff] (!%p192_p9)   ;;  %vm361_vm0 = vcmask (!%p192_p9), 130048   ;;  %v329_v2 = vld [vmem:[%s1267_s2 + $0x10] sm:$0xff] (!%p192_p9)  ;;  %v994_v3 = vmov (!%p192_p9), 0   ;;  %v328_v4 = vld [vmem:[%s1267_s2 + $0x8] sm:$0xff] (!%p192_p9) }
   0xe   : > { %195 = sbr.rel (%p192_p9) target bundleno = 583 (0x247), region = 40  ;;  %p220_p10 = scmp.lt.s32.totalorder (!%p192_p9), %s794_s30, 127  ;;  %v327_v1 = vld [vmem:[%s1267_s2] sm:$0xff] (!%p192_p9)  ;;  %830 = vmatprep.mubr.msk.bf16.mxu0 (!%p192_p9), %vm361_vm0, %v1078_v0  ;;  %850 = vmatprep.mubr.msk.bf16.mxu1 (!%p192_p9), %vm361_vm0, %v1078_v0  ;;  %v330_v5 = vld [vmem:[%s1267_s2 + $0x18] sm:$0xff] (!%p192_p9)  ;;  %vm601_vm1 = vcmask (!%p192_p9), 261120  }
   0xf   : > { %910 = vset.pattern.permute.xlu0 (!%p192_p9), %v994_v3  ;;  %911 = vset.pattern.permute.xlu1 (!%p192_p9), %v994_v3  ;;  %v595_v18 = vld [vmem:[%s1269_s4] sm:$0xff] (!%p192_p9)  ;;  %s216_s10 = sand.u32 (!%p192_p9), 1, %s984_s19   ;;  %s995_s25 = smov (!%p192_p9), [#allocation2]  }
  0x10   : > { %333 = vperm.xlu0 (!%p192_p9), %910, %v327_v1   ;;  %343 = vperm.xlu1 (!%p192_p9), %911, %v329_v2   ;;  %s793_s11 = sshll.u32 (!%p192_p9), %s216_s10, 5  ;;  %s934_s26 = sshll.u32 (!%p192_p9), %s995_s25, 4  ;;  %s935_s26 = int_to_ptr.vmem [resolvable:$false] %s934_s26 }
  0x11   : > { %s218_s13 = scalar_lea.vmem (!%p192_p9), [#allocation2], %s793_s11 }
  0x12   : > { %s730_s14 = sshll.u32 (!%p192_p9), %s218_s13, 4  ;;  %s1225_s14 = int_to_ptr.vmem [resolvable:$true] %s730_s14 }
  0x13   : > { %s930_s23 = scalar_lea.vmem (!%p192_p9), %s1225_s14, 512  ;;  %p937_p0 = scmp.lt.s32.totalorder (!%p192_p9), %s1225_s14, %s935_s26 }
  0x14   : > { %338 = vperm.xlu0 (!%p192_p9), %910, %v328_v4   ;;  %348 = vperm.xlu1 (!%p192_p9), %911, %v330_v5   ;;  %p931_p11 = scmp.ne.s32.totalorder (!%p192_p9), %s1225_s14, %s930_s23 }
  0x15   : > { %s1278_s30 = smov (!%p220_p10, %s794_s30), 127 }
  0x16   : > { %s795_s12 = sshll.u32 %s1278_s30, 3  ;;  %p932_p12 = pnand %p931_p11, %p1064_p5 }
  0x17   : > { %s1095_s15 = scalar_lea.vmem %s1265_s0, %s795_s12  ;;  %s813_s12 = sshll.u32 %s1047_s22, 9 }
  0x18   : > { %v243_v6 = vld [vmem:[%s1095_s15 + $0x80] sm:$0xff]  ;;  %v244_v7 = vld [vmem:[%s1095_s15 + $0x88] sm:$0xff]  ;;  %v245_v17 = vld [vmem:[%s1095_s15 + $0x90] sm:$0xff]  ;;  %598 = vperm.xlu0 %910, %v595_v18   ;;  %s1223_s17 = scalar_lea.hbm %s1270_s5, %s813_s12  ;;  %s716_s22 = scalar_lea.sflag [#allocation3], %s216_s10 }
  0x19   : > { %v275_v8 = vld [vmem:[%s1095_s15 + $0x180] sm:$0xff]  ;;  %v299_v9 = vpack.c.bf16 %v244_v7, %v243_v6  ;;  %v276_v10 = vld [vmem:[%s1095_s15 + $0x188] sm:$0xff]  ;;  %v246_v20 = vld [vmem:[%s1095_s15 + $0x98] sm:$0xff]  ;;  %p933_p13 = pneg %p932_p12  ;;  %s936_s30 = scalar_lea.vmem %s935_s26, 1024 }
  0x1a   : > { %v227_v11 = vld [vmem:[%s1095_s15] sm:$0xff]  ;;  %v228_v12 = vld [vmem:[%s1095_s15 + $0x8] sm:$0xff]  ;;  %v315_v13 = vpack.c.bf16 %v276_v10, %v275_v8  ;;  %v277_v21 = vld [vmem:[%s1095_s15 + $0x190] sm:$0xff]  ;;  %v300_v24 = vpack.c.bf16 %v246_v20, %v245_v17  ;;  %p938_p1 = scmp.lt.s32.totalorder %s936_s30, %s930_s23 }
  0x1b   : > { %v291_v14 = vpack.c.bf16 %v228_v12, %v227_v11  ;;  %v259_v15 = vld [vmem:[%s1095_s15 + $0x100] sm:$0xff]  ;;  %v260_v16 = vld [vmem:[%s1095_s15 + $0x108] sm:$0xff]  ;;  %854 = vmatprep.subr.msk.bf16.mxu0 %vm361_vm0, %v299_v9  ;;  %v278_v22 = vld [vmem:[%s1095_s15 + $0x198] sm:$0xff] }
  0x1c   : > { %v307_v19 = vpack.c.bf16 %v260_v16, %v259_v15  ;;  %862 = vmatprep.subr.msk.bf16.mxu1 %vm361_vm0, %v315_v13  ;;  %v316_v25 = vpack.c.bf16 %v278_v22, %v277_v21  ;;  %v229_v26 = vld [vmem:[%s1095_s15 + $0x10] sm:$0xff]  ;;  %v230_v27 = vld [vmem:[%s1095_s15 + $0x18] sm:$0xff]  ;;  %v247_v33 = vld [vmem:[%s1095_s15 + $0xa0] sm:$0xff]  ;;  %p939_p2 = por %p938_p1, %p937_p0 }
  0x1d   : > { %v369_v23 = vsel %vm361_vm0, %v291_v14, 0  ;;  %v261_v28 = vld [vmem:[%s1095_s15 + $0x110] sm:$0xff]  ;;  %v262_v30 = vld [vmem:[%s1095_s15 + $0x118] sm:$0xff]  ;;  %v292_v31 = vpack.c.bf16 %v230_v27, %v229_v26  ;;  %v248_v34 = vld [vmem:[%s1095_s15 + $0xa8] sm:$0xff] }
  0x1e   : > { %815 = vmatpush3.bf16.xpose.msra.mxu0 %v369_v23  ;;  %v417_v29 = vsel %vm361_vm0, %v307_v19, 0  ;;  %v308_v32 = vpack.c.bf16 %v262_v30, %v261_v28  ;;  %v279_v35 = vld [vmem:[%s1095_s15 + $0x1a0] sm:$0xff]  ;;  %v280_v36 = vld [vmem:[%s1095_s15 + $0x1a8] sm:$0xff]  ;;  %v301_v38 = vpack.c.bf16 %v248_v34, %v247_v33  ;;  %v249_v47 = vld [vmem:[%s1095_s15 + $0xb0] sm:$0xff]  ;;  %p940_p3 = pnand %p939_p2, %p933_p13 }
  0x1f   : > { %835 = vmatpush3.bf16.xpose.msra.mxu1 %v417_v29  ;;  %855 = vmatprep.subr.msk.bf16.mxu0 %vm361_vm0, %v300_v24  ;;  %v372_v37 = vsel %vm361_vm0, %v292_v31, 0  ;;  %v317_v40 = vpack.c.bf16 %v280_v36, %v279_v35  ;;  %v231_v41 = vld [vmem:[%s1095_s15 + $0x20] sm:$0xff]  ;;  %v232_v42 = vld [vmem:[%s1095_s15 + $0x28] sm:$0xff]  ;;  %v250_v48 = vld [vmem:[%s1095_s15 + $0xb8] sm:$0xff] }
  0x20   : > { %863 = vmatprep.subr.msk.bf16.mxu1 %vm361_vm0, %v316_v25  ;;  %v420_v39 = vsel %vm361_vm0, %v308_v32, 0  ;;  %v263_v43 = vld [vmem:[%s1095_s15 + $0x120] sm:$0xff]  ;;  %v264_v44 = vld [vmem:[%s1095_s15 + $0x128] sm:$0xff]  ;;  %v293_v45 = vpack.c.bf16 %v232_v42, %v231_v41  ;;  %v281_v49 = vld [vmem:[%s1095_s15 + $0x1b0] sm:$0xff]  ;;  %v302_v52 = vpack.c.bf16 %v250_v48, %v249_v47 }
  0x21   : > { %v309_v46 = vpack.c.bf16 %v264_v44, %v263_v43  ;;  %v282_v50 = vld [vmem:[%s1095_s15 + $0x1b8] sm:$0xff]  ;;  %v233_v55 = vld [vmem:[%s1095_s15 + $0x30] sm:$0xff]  ;;  %v251_v61 = vld [vmem:[%s1095_s15 + $0xc0] sm:$0xff] }
  0x22   : > { %v375_v51 = vsel %vm361_vm0, %v293_v45, 0  ;;  %v318_v54 = vpack.c.bf16 %v282_v50, %v281_v49  ;;  %v234_v56 = vld [vmem:[%s1095_s15 + $0x38] sm:$0xff]  ;;  %v265_v57 = vld [vmem:[%s1095_s15 + $0x130] sm:$0xff]  ;;  %v252_v62 = vld [vmem:[%s1095_s15 + $0xc8] sm:$0xff] }
  0x23   : > { %v423_v53 = vsel %vm361_vm0, %v309_v46, 0  ;;  %v266_v58 = vld [vmem:[%s1095_s15 + $0x138] sm:$0xff]  ;;  %v294_v59 = vpack.c.bf16 %v234_v56, %v233_v55  ;;  %v283_v63 = vld [vmem:[%s1095_s15 + $0x1c0] sm:$0xff]  ;;  %v284_v1 = vld [vmem:[%s1095_s15 + $0x1c8] sm:$0xff]  ;;  %v303_v4 = vpack.c.bf16 %v252_v62, %v251_v61 }
  0x24   : > { %v310_v60 = vpack.c.bf16 %v266_v58, %v265_v57  ;;  %v319_v6 = vpack.c.bf16 %v284_v1, %v283_v63  ;;  %v235_v7 = vld [vmem:[%s1095_s15 + $0x40] sm:$0xff]  ;;  %v236_v8 = vld [vmem:[%s1095_s15 + $0x48] sm:$0xff]  ;;  %v253_v13 = vld [vmem:[%s1095_s15 + $0xd0] sm:$0xff] }
  0x25   : > { %v378_v2 = vsel %vm361_vm0, %v294_v59, 0  ;;  %v267_v9 = vld [vmem:[%s1095_s15 + $0x140] sm:$0xff]  ;;  %v268_v10 = vld [vmem:[%s1095_s15 + $0x148] sm:$0xff]  ;;  %v295_v11 = vpack.c.bf16 %v236_v8, %v235_v7  ;;  %v254_v14 = vld [vmem:[%s1095_s15 + $0xd8] sm:$0xff] }
  0x26   : > { %817 = vmatpush3.bf16.xpose.msra.mxu0 %v372_v37  ;;  %v426_v5 = vsel %vm361_vm0, %v310_v60, 0  ;;  %v311_v12 = vpack.c.bf16 %v268_v10, %v267_v9  ;;  %v285_v15 = vld [vmem:[%s1095_s15 + $0x1d0] sm:$0xff]  ;;  %v286_v16 = vld [vmem:[%s1095_s15 + $0x1d8] sm:$0xff]  ;;  %v304_v18 = vpack.c.bf16 %v254_v14, %v253_v13  ;;  %v255_v27 = vld [vmem:[%s1095_s15 + $0xe0] sm:$0xff] }
  0x27   : > { %837 = vmatpush3.bf16.xpose.msra.mxu1 %v420_v39  ;;  %856 = vmatprep.subr.msk.bf16.mxu0 %vm361_vm0, %v301_v38  ;;  %v381_v17 = vsel %vm361_vm0, %v295_v11, 0  ;;  %v320_v20 = vpack.c.bf16 %v286_v16, %v285_v15  ;;  %v237_v21 = vld [vmem:[%s1095_s15 + $0x50] sm:$0xff]  ;;  %v238_v22 = vld [vmem:[%s1095_s15 + $0x58] sm:$0xff]  ;;  %v256_v28 = vld [vmem:[%s1095_s15 + $0xe8] sm:$0xff] }
  0x28   : > { %864 = vmatprep.subr.msk.bf16.mxu1 %vm361_vm0, %v317_v40  ;;  %v429_v19 = vsel %vm361_vm0, %v311_v12, 0  ;;  %v269_v23 = vld [vmem:[%s1095_s15 + $0x150] sm:$0xff]  ;;  %v270_v24 = vld [vmem:[%s1095_s15 + $0x158] sm:$0xff]  ;;  %v296_v25 = vpack.c.bf16 %v238_v22, %v237_v21  ;;  %v287_v29 = vld [vmem:[%s1095_s15 + $0x1e0] sm:$0xff]  ;;  %v305_v32 = vpack.c.bf16 %v256_v28, %v255_v27 }
  0x29   : > { %v312_v26 = vpack.c.bf16 %v270_v24, %v269_v23  ;;  %v288_v30 = vld [vmem:[%s1095_s15 + $0x1e8] sm:$0xff]  ;;  %v239_v35 = vld [vmem:[%s1095_s15 + $0x60] sm:$0xff]  ;;  %v257_v41 = vld [vmem:[%s1095_s15 + $0xf0] sm:$0xff] }
  0x2a   : > { %v384_v31 = vsel %vm361_vm0, %v296_v25, 0  ;;  %v321_v34 = vpack.c.bf16 %v288_v30, %v287_v29  ;;  %v240_v36 = vld [vmem:[%s1095_s15 + $0x68] sm:$0xff]  ;;  %v271_v37 = vld [vmem:[%s1095_s15 + $0x160] sm:$0xff]  ;;  %v258_v42 = vld [vmem:[%s1095_s15 + $0xf8] sm:$0xff] }
  0x2b   : > { %v432_v33 = vsel %vm361_vm0, %v312_v26, 0  ;;  %v272_v38 = vld [vmem:[%s1095_s15 + $0x168] sm:$0xff]  ;;  %v297_v39 = vpack.c.bf16 %v240_v36, %v239_v35  ;;  %v289_v43 = vld [vmem:[%s1095_s15 + $0x1f0] sm:$0xff]  ;;  %v290_v44 = vld [vmem:[%s1095_s15 + $0x1f8] sm:$0xff]  ;;  %v306_v46 = vpack.c.bf16 %v258_v42, %v257_v41 }
  0x2c   : > { %v313_v40 = vpack.c.bf16 %v272_v38, %v271_v37  ;;  %v322_v48 = vpack.c.bf16 %v290_v44, %v289_v43  ;;  %v241_v49 = vld [vmem:[%s1095_s15 + $0x70] sm:$0xff]  ;;  %v242_v50 = vld [vmem:[%s1095_s15 + $0x78] sm:$0xff]  ;;  %v913_v57 = vld [vmem:[%s1266_s1 + $0x8] sm:$0xff]  }
  0x2d   : > { %v387_v45 = vsel %vm361_vm0, %v297_v39, 0 }
  0x2e   : > { %819 = vmatpush3.bf16.xpose.msra.mxu0 %v375_v51  ;;  %v435_v47 = vsel %vm361_vm0, %v313_v40, 0  ;;  %v273_v51 = vld [vmem:[%s1095_s15 + $0x170] sm:$0xff] }
  0x2f   : > { %839 = vmatpush3.bf16.xpose.msra.mxu1 %v423_v53  ;;  %857 = vmatprep.subr.msk.bf16.mxu0 %vm361_vm0, %v302_v52  ;;  %v274_v52 = vld [vmem:[%s1095_s15 + $0x178] sm:$0xff]  ;;  %v298_v53 = vpack.c.bf16 %v242_v50, %v241_v49 }
  0x30   : > { %865 = vmatprep.subr.msk.bf16.mxu1 %vm361_vm0, %v318_v54  ;;  %v314_v54 = vpack.c.bf16 %v274_v52, %v273_v51 }
  0x31   : > { %v390_v55 = vsel %vm361_vm0, %v298_v53, 0 }
  0x32   : > { %v438_v56 = vsel %vm361_vm0, %v314_v54, 0  ;;  %v586_v54 = vld [vmem:[%s1268_s3] sm:$0xf] }
  0x36   : > { %821 = vmatpush3.bf16.xpose.msra.mxu0 %v378_v2 }
  0x37   : > { %841 = vmatpush3.bf16.xpose.msra.mxu1 %v426_v5  ;;  %858 = vmatprep.subr.msk.bf16.mxu0 %vm361_vm0, %v303_v4 }
  0x38   : > { %866 = vmatprep.subr.msk.bf16.mxu1 %vm361_vm0, %v319_v6 }
  0x3e   : > { %823 = vmatpush3.bf16.xpose.msra.mxu0 %v381_v17 }
  0x3f   : > { %843 = vmatpush3.bf16.xpose.msra.mxu1 %v429_v19  ;;  %859 = vmatprep.subr.msk.bf16.mxu0 %vm361_vm0, %v304_v18 }
  0x40   : > { %867 = vmatprep.subr.msk.bf16.mxu1 %vm361_vm0, %v320_v20 }
  0x46   : > { %825 = vmatpush3.bf16.xpose.msra.mxu0 %v384_v31 }
  0x47   : > { %845 = vmatpush3.bf16.xpose.msra.mxu1 %v432_v33  ;;  %860 = vmatprep.subr.msk.bf16.mxu0 %vm361_vm0, %v305_v32 }
  0x48   : > { %868 = vmatprep.subr.msk.bf16.mxu1 %vm361_vm0, %v321_v34 }
  0x4e   : > { %827 = vmatpush3.bf16.xpose.msra.mxu0 %v387_v45 }
  0x4f   : > { %847 = vmatpush3.bf16.xpose.msra.mxu1 %v435_v47  ;;  %861 = vmatprep.subr.msk.bf16.mxu0 %vm361_vm0, %v306_v46 }
  0x50   : > { %869 = vmatprep.subr.msk.bf16.mxu1 %vm361_vm0, %v322_v48 }
  0x56   : > { %829 = vmatpush3.bf16.xpose.msra.mxu0 %v390_v55 }
  0x57   : > { %849 = vmatpush3.bf16.xpose.msra.mxu1 %v438_v56 }
  0x5d   : > { %831 = vmatmul.mubr.msk.bf16.vlgmr.msra.gmra.mrb[0].mxu0 %vm361_vm0, %v1078_v0 }
  0x5e   : > { %851 = vmatmul.mubr.msk.bf16.vlgmr.msra.gmra.mrb[0].mxu1 %vm361_vm0, %v1078_v0  ;;  %832 = vmatprep.mubr.msk.bf16.mxu0 %vm361_vm0, %v913_v57 }
  0x5f   : > { %852 = vmatprep.mubr.msk.bf16.mxu1 %vm361_vm0, %v913_v57 }
  0x65   : > { %833 = vmatmul.mubr.msk.bf16.gmra.mrb[4].mxu0 %vm361_vm0, %v913_v57 }
  0x66   : > { %853 = vmatmul.mubr.msk.bf16.gmra.mrb[4].mxu1 %vm361_vm0, %v913_v57  ;;  %637 = vmatprep.mubr.bf16.mxu0 %v994_v3 }
  0x67   : > { %678 = vmatprep.mubr.bf16.mxu1 %v994_v3 }
  0x8f   : > { %v334_v58 = vpop.permute.xlu0 %333  ;;  %v344_v61 = vpop.permute.xlu1 %343 }
  0x93   : > { %v339_v59 = vpop.permute.xlu0 %338  ;;  %v349_v24 = vpop.permute.xlu1 %348 }
  0x97   : > { %v599_v55 = vpop.permute.xlu0 %598 }
 0x130   : > { %v498_v60 = vpop.f32.mrb[0].mxu0 }
 0x131   : > { %v499_v62 = vadd.f32 %v498_v60, %v334_v58  ;;  %v551_v63 = vpop.f32.mrb[0].mxu1  ;;  %v500_v1 = vpop.f32.mrb[1].mxu0 }
 0x132   : > { %v552_v0 = vadd.f32 %v551_v63, %v334_v58  ;;  %v501_v2 = vadd.f32 %v500_v1, %v334_v58  ;;  %v553_v4 = vpop.f32.mrb[1].mxu1  ;;  %v502_v5 = vpop.f32.mrb[2].mxu0 }
 0x133   : > { %v554_v6 = vadd.f32 %v553_v4, %v334_v58  ;;  %v503_v7 = vadd.f32 %v502_v5, %v339_v59  ;;  %v555_v8 = vpop.f32.mrb[2].mxu1  ;;  %v504_v9 = vpop.f32.mrb[3].mxu0  ;;  %v570_v13 = vmax.f32 %v499_v62, 0.0 }
 0x134   : > { %v556_v10 = vadd.f32 %v555_v8, %v339_v59  ;;  %v505_v11 = vadd.f32 %v504_v9, %v339_v59  ;;  %v557_v12 = vpop.f32.mrb[3].mxu1  ;;  %v572_v15 = vmax.f32 %v552_v0, 0.0  ;;  %v571_v16 = vmax.f32 %v501_v2, 0.0 }
 0x135   : > { %v574_v3 = vmax.f32 %v503_v7, 0.0  ;;  %v558_v14 = vadd.f32 %v557_v12, %v339_v59  ;;  %v573_v19 = vmax.f32 %v554_v6, 0.0 }
 0x136   : > { %v576_v17 = vmax.f32 %v556_v10, 0.0  ;;  %v575_v18 = vmax.f32 %v505_v11, 0.0 }
 0x137   : > { %v587_v20 = vpack.c.bf16 %v574_v3, %v570_v13  ;;  %v577_v21 = vmax.f32 %v558_v14, 0.0 }
 0x138   : > { %v589_v22 = vpack.c.bf16 %v576_v17, %v572_v15  ;;  %v588_v23 = vpack.c.bf16 %v575_v18, %v571_v16  ;;  %v508_v25 = vpop.f32.mrb[4].mxu0 }
 0x139   : > { %v590_v26 = vpack.c.bf16 %v577_v21, %v573_v19  ;;  %v509_v27 = vadd.f32 %v508_v25, %v344_v61  ;;  %v561_v28 = vpop.f32.mrb[4].mxu1  ;;  %v510_v29 = vpop.f32.mrb[5].mxu0 }
 0x13a   : > { %v562_v30 = vadd.f32 %v561_v28, %v344_v61  ;;  %v511_v31 = vadd.f32 %v510_v29, %v344_v61  ;;  %v563_v32 = vpop.f32.mrb[5].mxu1  ;;  %v512_v33 = vpop.f32.mrb[6].mxu0  ;;  %605 = vmatprep.subr.bf16.mxu0 %v588_v23 }
 0x13b   : > { %v564_v34 = vadd.f32 %v563_v32, %v344_v61  ;;  %v513_v35 = vadd.f32 %v512_v33, %v349_v24  ;;  %v565_v36 = vpop.f32.mrb[6].mxu1  ;;  %646 = vmatprep.subr.bf16.mxu1 %v590_v26  ;;  %v514_v37 = vpop.f32.mrb[7].mxu0  ;;  %606 = vmatpush1.bf16.msra.mxu0 %v587_v20  ;;  %v578_v41 = vmax.f32 %v509_v27, 0.0 }
 0x13c   : > { %v566_v38 = vadd.f32 %v565_v36, %v349_v24  ;;  %v515_v39 = vadd.f32 %v514_v37, %v349_v24  ;;  %v567_v40 = vpop.f32.mrb[7].mxu1  ;;  %647 = vmatpush1.bf16.msra.mxu1 %v589_v22  ;;  %v580_v44 = vmax.f32 %v562_v30, 0.0  ;;  %v579_v45 = vmax.f32 %v511_v31, 0.0 }
 0x13d   : > { %v582_v42 = vmax.f32 %v513_v35, 0.0  ;;  %v568_v43 = vadd.f32 %v567_v40, %v349_v24  ;;  %v581_v48 = vmax.f32 %v564_v34, 0.0 }
 0x13e   : > { %v584_v46 = vmax.f32 %v566_v38, 0.0  ;;  %v583_v47 = vmax.f32 %v515_v39, 0.0 }
 0x13f   : > { %v591_v49 = vpack.c.bf16 %v582_v42, %v578_v41  ;;  %v585_v50 = vmax.f32 %v568_v43, 0.0 }
 0x140   : > { %v593_v51 = vpack.c.bf16 %v584_v46, %v580_v44  ;;  %v592_v52 = vpack.c.bf16 %v583_v47, %v579_v45 }
 0x141   : > { %v594_v53 = vpack.c.bf16 %v585_v50, %v581_v48 }
 0x142   : > { %607 = vmatprep.subr.bf16.mxu0 %v592_v52 }
 0x143   : > { %648 = vmatprep.subr.bf16.mxu1 %v594_v53  ;;  %608 = vmatpush1.bf16.msra.mxu0 %v591_v49 }
 0x144   : > { %649 = vmatpush1.bf16.msra.mxu1 %v593_v51 }
 0x146   : > { %802 = vmatmul.mubr.msk.bf16.vlgmr.msra.gmra.mrb[8].mxu0 %vm601_vm1, %v586_v54 }
 0x147   : > { %803 = vmatmul.mubr.msk.bf16.vlgmr.msra.gmra.mrb[8].mxu1 %vm601_vm1, %v586_v54 }
 0x219   : > { %v639_v56 = vpop.f32.mrb[8].mxu0 }
 0x21a   : > { %v640_v57 = vadd.f32 %v639_v56, %v599_v55  ;;  %v680_v58 = vpop.f32.mrb[8].mxu1  ;;  %v641_v59 = vpop.f32.mrb[9].mxu0 }
 0x21b   : > { %v681_v60 = vadd.f32 %v680_v58, %v599_v55  ;;  %v642_v61 = vadd.f32 %v641_v59, %v599_v55  ;;  %v682_v62 = vpop.f32.mrb[9].mxu1  ;;  %v643_v63 = vpop.f32.mrb[10].mxu0 }
 0x21c   : > { %v804_v1 = vmul.f32 -1.442695, %v640_v57  ;;  %v683_v0 = vadd.f32 %v682_v62, %v599_v55  ;;  %v684_v2 = vpop.f32.mrb[10].mxu1  ;;  %v644_v4 = vpop.f32.mrb[11].mxu0 }
 0x21d   : > { %v806_v5 = vmul.f32 -1.442695, %v681_v60  ;;  %v805_v6 = vmul.f32 -1.442695, %v642_v61  ;;  %v685_v7 = vpop.f32.mrb[11].mxu1 }
 0x21e   : > { %914 = vpow2.f32 %v804_v1  ;;  %v807_v8 = vmul.f32 -1.442695, %v683_v0 }
 0x21f   : > { %916 = vpow2.f32 %v806_v5 }
 0x220   : > { %918 = vpow2.f32 %v805_v6 }
 0x221   : > { %920 = vpow2.f32 %v807_v8 }
 0x228   : > { %v915_v9 = vpop.eup %914 }
 0x229   : > { %v917_v10 = vpop.eup %916  ;;  %v699_v11 = vadd.f32 1.0, %v915_v9 }
 0x22a   : > { %v919_v12 = vpop.eup %918  ;;  %v701_v13 = vadd.f32 1.0, %v917_v10 }
 0x22b   : > { %v921_v3 = vpop.eup %920  ;;  %922 = vrcp.f32 %v699_v11  ;;  %v700_v14 = vadd.f32 1.0, %v919_v12 }
 0x22c   : > { %924 = vrcp.f32 %v701_v13  ;;  %v702_v15 = vadd.f32 1.0, %v921_v3 }
 0x22d   : > { %926 = vrcp.f32 %v700_v14 }
 0x22e   : > { %928 = vrcp.f32 %v702_v15 }
 0x235   : > { %v923_v16 = vpop.eup %922 }
 0x236   : > { %v925_v17 = vpop.eup %924  ;;  %711 = vst [vmem:[%s218_s13] sm:$0xff] %v923_v16 }
 0x237   : > { %v927_v18 = vpop.eup %926  ;;  %713 = vst [vmem:[%s218_s13 + $0x10] sm:$0xff] %v925_v17 }
 0x238   : > { %v929_v19 = vpop.eup %928  ;;  %712 = vst [vmem:[%s218_s13 + $0x8] sm:$0xff] %v927_v18 }
 0x239   : > { %714 = vst [vmem:[%s218_s13 + $0x18] sm:$0xff] %v929_v19 }
 0x23a   : > { %943 = shalt.err (!%p940_p3)
}
 0x23b   : > { %s944_s6 = scalar_lea.hbm %s1223_s17, 512  ;;  %s948_s9 = scalar_lea.hbm %s1270_s5, 1024 }
 0x23c   : > { %p945_p4 = scmp.ne.s32.totalorder %s1223_s17, %s944_s6  ;;  %p949_p9 = scmp.lt.u32.totalorder %s1223_s17, %s1270_s5 }
 0x23d   : > { %p950_p10 = scmp.lt.u32.totalorder %s948_s9, %s944_s6  ;;  %p952_p12 = scmp.lt.u32.totalorder %s944_s6, %s1223_s17 }
 0x23e   : > { %p946_p7 = pnand %p945_p4, %p1064_p5 }
 0x23f   : > { %p951_p11 = por %p950_p10, %p949_p9 }
 0x240   : > { %p947_p8 = pneg %p946_p7 }
 0x241   : > { %p953_p13 = por %p952_p12, %p951_p11 }
 0x243   : > { %p954_p0 = pnand %p953_p13, %p947_p8 }
 0x245   : > { %957 = shalt.err (!%p954_p0)
}
 0x246   : > { %870 = dma.vmem_to_hbm [thread:$0]  (%p1064_p5), %s1225_s14, 512, %s1223_s17, %s716_s22  }
 0x247 PF: > { %p876_p1 = scmp.ge.s32.totalorder %s992_s21, 2  ;;  %s742_s12 = sand.u32 1, %s980_s18  }
 0x248   : > { %s743_s13 = scalar_lea.sflag [#allocation3], %s742_s12 }
 0x249   : > { %p873_p2 = pnand %p876_p1, %p1068_p6 }
 0x24b   : > { %975 = dma.done.wait (!%p873_p2), %s743_s13, 512  }
 0x24c   : > { %977 = vsyncadd (!%p873_p2), %s743_s13, 4294966784  ;;  %p15_p3 = scmp.ge.s32.totalorder %s1051_s24, 4   ;;  %s1273_s18 = smov %s984_s19 }
 0x24d   : > { %s1274_s19 = smov %s988_s20  ;;  %s1275_s20 = smov %s1062_s27 }
 0x24e   : > { %s1276_s21 = smov %s1051_s24  ;;  %17 = sbr.rel (!%p15_p3) target bundleno = 3 (0x3), region = 75 }
 0x255   :  { %748 = vsyncpa [#allocation3], 1 }
 0x256   :  { %750 = vsyncpa [#allocation3 + $0x1], 1 }

</bundles_post_ra>
